<compile_context>
chip_gen: v7x
topology: tpu7x:2x2x1
jax: 0.10.0
libtpu: 0.0.40
codegen_flags: <defaults>
</compile_context>

<pallas_src>
import math

import jax
import jax.numpy as jnp
from jax import lax
from jax.experimental import pallas as pl
from jax.experimental.pallas import tpu as pltpu


def _round_up(x, m):
    return ((x + m - 1) // m) * m


def _pad_to(x, shape):
    pads = [(0, s - d) for d, s in zip(x.shape, shape)]
    if not any(hi for _, hi in pads):
        return x
    return jnp.pad(x, pads)


def _choose_tq(T, tq):
    """Pick a query tile: full (padded) sequence if it fits, otherwise the
    largest of {tq, tq/2, tq/4} that minimises host-side padding waste."""
    if T <= tq:
        return _round_up(T, 8)
    best_tq, best_waste = None, None
    for cand in (tq, tq // 2, tq // 4):
        cand = max(_round_up(cand, 8), 8)
        waste = _round_up(T, cand) - T
        if best_waste is None or waste < best_waste:
            best_tq, best_waste = cand, waste
    return best_tq


def _make_kernel(t_actual, t_pad):
    mask_rows = t_actual < t_pad

    def kernel(q_ref, k_ref, v_ref,
               wq_ref, bq_ref, wk_ref, bk_ref, wv_ref, bv_ref,
               wo_ref, bo_ref,
               o_ref,
               kp_ref, vo_ref):
        qt = pl.program_id(1)

        # ---- once per batch element: project k; project v and fuse with the
        #      output projection (vo = (v@Wv + bv) @ Wo); cache in VMEM scratch.
        @pl.when(qt == 0)
        def _():
            kp = lax.dot_general(
                k_ref[...], wk_ref[...],
                dimension_numbers=(((1,), (0,)), ((), ())),
                preferred_element_type=jnp.float32) + bk_ref[...]
            vp = lax.dot_general(
                v_ref[...], wv_ref[...],
                dimension_numbers=(((1,), (0,)), ((), ())),
                preferred_element_type=jnp.float32) + bv_ref[...]
            if mask_rows:
                # Zero padded value rows: padded keys then contribute nothing.
                row = lax.broadcasted_iota(jnp.int32, vp.shape, 0)
                vp = jnp.where(row < t_actual, vp, 0.0)
            vo = lax.dot_general(
                vp.astype(wo_ref.dtype), wo_ref[...],
                dimension_numbers=(((1,), (0,)), ((), ())),
                preferred_element_type=jnp.float32)
            kp_ref[...] = kp.astype(kp_ref.dtype)
            vo_ref[...] = vo.astype(vo_ref.dtype)

        # ---- per query tile. 1/sqrt(d_k) is already folded into Wq/bq.
        qp = lax.dot_general(
            q_ref[...], wq_ref[...],
            dimension_numbers=(((1,), (0,)), ((), ())),
            preferred_element_type=jnp.float32) + bq_ref[...]
        qp = qp.astype(kp_ref.dtype)

        # scores: contract the feature (last) axes -> (TQ, T_pad); no transpose.
        s = lax.dot_general(
            qp, kp_ref[...],
            dimension_numbers=(((1,), (1,)), ((), ())),
            preferred_element_type=jnp.float32)
        # sigmoid(x) == 0.5 * tanh(0.5 * x) + 0.5  (single EUP transcendental)
        p = 0.5 * jnp.tanh(0.5 * s) + 0.5

        # attention + output projection in one matmul (Wo folded into vo).
        out = jnp.dot(p.astype(vo_ref.dtype), vo_ref[...],
                      preferred_element_type=jnp.float32) + bo_ref[...]
        o_ref[...] = out.astype(o_ref.dtype)

    return kernel


def self_attention_layer(q, k, v, params, *, tq=256,
                         compute_dtype=jnp.bfloat16):
    """Pallas implementation of SelfAttentionlayer.forward.

    q, k, v: [B, T, amp_dim] float32
    params : dict with wq, bq, wk, bk, wv, bv, wo, bo
             (Linear weights stored as [in, out], biases as [1, out])
    """
    B, T, amp_dim = q.shape
    att_dim = params["wq"].shape[1]
    out_dtype = q.dtype

    d_k = amp_dim                      # matches PyTorch: self.d_k = amp_dim
    scale = 1.0 / math.sqrt(d_k)

    amp_p = _round_up(amp_dim, 128)
    att_p = _round_up(att_dim, 128)
    tq = _choose_tq(T, tq)
    t_pad = _round_up(T, tq)
    n_qt = t_pad // tq

    cd = compute_dtype
    q_p = _pad_to(q, (B, t_pad, amp_p)).astype(cd)
    k_p = _pad_to(k, (B, t_pad, amp_p)).astype(cd)
    v_p = _pad_to(v, (B, t_pad, amp_p)).astype(cd)

    # Scale folded into the query projection; zero-padding keeps semantics.
    wq = _pad_to(params["wq"] * scale, (amp_p, att_p)).astype(cd)
    bq = _pad_to(params["bq"] * scale, (1, att_p)).astype(jnp.float32)
    wk = _pad_to(params["wk"], (amp_p, att_p)).astype(cd)
    bk = _pad_to(params["bk"], (1, att_p)).astype(jnp.float32)
    wv = _pad_to(params["wv"], (amp_p, att_p)).astype(cd)
    bv = _pad_to(params["bv"], (1, att_p)).astype(jnp.float32)
    wo = _pad_to(params["wo"], (att_p, amp_p)).astype(cd)
    bo = _pad_to(params["bo"], (1, amp_p)).astype(jnp.float32)

    q_spec = pl.BlockSpec((None, tq, amp_p), lambda b, qt_: (b, qt_, 0))
    kv_spec = pl.BlockSpec((None, t_pad, amp_p), lambda b, qt_: (b, 0, 0))
    out_spec = pl.BlockSpec((None, tq, amp_p), lambda b, qt_: (b, qt_, 0))

    def full2d(shape):
        return pl.BlockSpec(shape, lambda b, qt_: (0, 0))

    grid_spec = pltpu.PrefetchScalarGridSpec(
        num_scalar_prefetch=0,
        grid=(B, n_qt),
        in_specs=[
            q_spec, kv_spec, kv_spec,
            full2d((amp_p, att_p)), full2d((1, att_p)),   # wq (scaled), bq (scaled)
            full2d((amp_p, att_p)), full2d((1, att_p)),   # wk, bk
            full2d((amp_p, att_p)), full2d((1, att_p)),   # wv, bv
            full2d((att_p, amp_p)), full2d((1, amp_p)),   # wo, bo
        ],
        out_specs=out_spec,
        scratch_shapes=[
            pltpu.VMEM((t_pad, att_p), cd),   # cached k projection
            pltpu.VMEM((t_pad, amp_p), cd),   # cached (v proj @ Wo), pad rows = 0
        ],
    )

    out_p = pl.pallas_call(
        _make_kernel(T, t_pad),
        out_shape=jax.ShapeDtypeStruct((B, t_pad, amp_p), out_dtype),
        grid_spec=grid_spec,
        compiler_params=pltpu.CompilerParams(
            dimension_semantics=("parallel", "arbitrary"),
            vmem_limit_bytes=64 * 1024 * 1024,
        ),
    )(q_p, k_p, v_p, wq, bq, wk, bk, wv, bv, wo, bo)

    return out_p[:, :T, :amp_dim]


def _reference(q, k, v, params):
    """Pure-JAX f32 reference mirroring the PyTorch forward."""
    d_k = q.shape[-1]
    qp = q @ params["wq"] + params["bq"][0]
    kp = k @ params["wk"] + params["bk"][0]
    vp = v @ params["wv"] + params["bv"][0]
    scores = jax.nn.sigmoid(
        jnp.einsum("btd,bsd->bts", qp, kp) / math.sqrt(d_k))
    attn = jnp.einsum("bts,bsd->btd", scores, vp)
    return attn @ params["wo"] + params["bo"][0]


def _init_params(key, amp_dim, att_dim):
    """Deterministic synthetic init (Linear weights stored as [in, out])."""
    ks = jax.random.split(key, 8)
    bound_in = 1.0 / math.sqrt(amp_dim)
    bound_att = 1.0 / math.sqrt(att_dim)
    return {
        "wq": jax.random.uniform(ks[0], (amp_dim, att_dim), jnp.float32,
                                 -bound_in, bound_in),
        "bq": jax.random.uniform(ks[1], (1, att_dim), jnp.float32,
                                 -bound_in, bound_in),
        "wk": jax.random.uniform(ks[2], (amp_dim, att_dim), jnp.float32,
                                 -bound_in, bound_in),
        "bk": jax.random.uniform(ks[3], (1, att_dim), jnp.float32,
                                 -bound_in, bound_in),
        "wv": jax.random.uniform(ks[4], (amp_dim, att_dim), jnp.float32,
                                 -bound_in, bound_in),
        "bv": jax.random.uniform(ks[5], (1, att_dim), jnp.float32,
                                 -bound_in, bound_in),
        "wo": jax.random.uniform(ks[6], (att_dim, amp_dim), jnp.float32,
                                 -bound_att, bound_att),
        "bo": jax.random.uniform(ks[7], (1, amp_dim), jnp.float32,
                                 -bound_att, bound_att),
    }


if __name__ == "__main__":
    key = jax.random.PRNGKey(0)
    B, T = 2, 12
    # Small stand-ins for the default 257/257; deliberately not lane/sublane
    # multiples so the host-side padding + in-kernel key/value masking is used.
    amp_dim, att_dim = 48, 40

    k_params, k_q, k_k, k_v = jax.random.split(key, 4)
    params = _init_params(k_params, amp_dim, att_dim)

    q = jax.random.normal(k_q, (B, T, amp_dim), jnp.float32)
    k = jax.random.normal(k_k, (B, T, amp_dim), jnp.float32)
    v = jax.random.normal(k_v, (B, T, amp_dim), jnp.float32)

    out = self_attention_layer(q, k, v, params)
    out = jax.block_until_ready(out)

    ref = _reference(q, k, v, params)
    assert out.shape == (B, T, amp_dim)
    err = jnp.max(jnp.abs(out - ref))
    # bf16 MXU operands (f32 accumulation) -> looser tolerance than pure f32.
    assert jnp.allclose(out, ref, atol=5e-2, rtol=5e-2), f"max abs err {err}"

    print("KERNEL_OK")
</pallas_src>

<mosaic_0001>
module attributes {stable_mosaic.version = 11 : i64} {
  func.func @kernel(%arg0: i32, %arg1: i32, %arg2: memref<1x16x128xbf16, #tpu.memory_space<vmem>>, %arg3: memref<1x16x128xbf16, #tpu.memory_space<vmem>>, %arg4: memref<1x16x128xbf16, #tpu.memory_space<vmem>>, %arg5: memref<128x128xbf16, #tpu.memory_space<vmem>>, %arg6: memref<1x128xf32, #tpu.memory_space<vmem>>, %arg7: memref<128x128xbf16, #tpu.memory_space<vmem>>, %arg8: memref<1x128xf32, #tpu.memory_space<vmem>>, %arg9: memref<128x128xbf16, #tpu.memory_space<vmem>>, %arg10: memref<1x128xf32, #tpu.memory_space<vmem>>, %arg11: memref<128x128xbf16, #tpu.memory_space<vmem>>, %arg12: memref<1x128xf32, #tpu.memory_space<vmem>>, %arg13: memref<1x16x128xf32, #tpu.memory_space<vmem>>, %arg14: memref<16x128xbf16, #tpu.memory_space<vmem>>, %arg15: memref<16x128xbf16, #tpu.memory_space<vmem>>) attributes {dimension_semantics = [#tpu.dimension_semantics<parallel>, #tpu.dimension_semantics<arbitrary>], iteration_bounds = array<i64: 2, 1>, scalar_prefetch = 0 : i64, scratch_operands = 2 : i64, tpu.core_type = #tpu.core_type<tc>, window_params = [{transform_indices = @transform_0, window_bounds = array<i64: 1, 16, 128>}, {transform_indices = @transform_1, window_bounds = array<i64: 1, 16, 128>}, {transform_indices = @transform_2, window_bounds = array<i64: 1, 16, 128>}, {pipeline_mode = #tpu.pipeline_mode<synchronous>, transform_indices = @transform_3, window_bounds = array<i64: 128, 128>}, {pipeline_mode = #tpu.pipeline_mode<synchronous>, transform_indices = @transform_4, window_bounds = array<i64: 1, 128>}, {pipeline_mode = #tpu.pipeline_mode<synchronous>, transform_indices = @transform_5, window_bounds = array<i64: 128, 128>}, {pipeline_mode = #tpu.pipeline_mode<synchronous>, transform_indices = @transform_6, window_bounds = array<i64: 1, 128>}, {pipeline_mode = #tpu.pipeline_mode<synchronous>, transform_indices = @transform_7, window_bounds = array<i64: 128, 128>}, {pipeline_mode = #tpu.pipeline_mode<synchronous>, transform_indices = @transform_8, window_bounds = array<i64: 1, 128>}, {pipeline_mode = #tpu.pipeline_mode<synchronous>, transform_indices = @transform_9, window_bounds = array<i64: 128, 128>}, {pipeline_mode = #tpu.pipeline_mode<synchronous>, transform_indices = @transform_10, window_bounds = array<i64: 1, 128>}, {transform_indices = @transform_11, window_bounds = array<i64: 1, 16, 128>}]} {
    %c0_i32 = arith.constant 0 : i32
    %0 = arith.cmpi eq, %arg1, %c0_i32 : i32
    %1 = arith.extui %0 : i1 to i32
    %c0_i32_0 = arith.constant 0 : i32
    %2 = arith.cmpi ne, %1, %c0_i32_0 : i32
    scf.if %2 {
      %c0_21 = arith.constant 0 : index
      %c0_22 = arith.constant 0 : index
      %c0_23 = arith.constant 0 : index
      %29 = vector.load %arg3[%c0_21, %c0_22, %c0_23] : memref<1x16x128xbf16, #tpu.memory_space<vmem>>, vector<1x16x128xbf16>
      %30 = vector.shape_cast %29 : vector<1x16x128xbf16> to vector<16x128xbf16>
      %c0_24 = arith.constant 0 : index
      %c0_25 = arith.constant 0 : index
      %31 = vector.load %arg7[%c0_24, %c0_25] : memref<128x128xbf16, #tpu.memory_space<vmem>>, vector<128x128xbf16>
      %cst_26 = arith.constant dense<0.000000e+00> : vector<16x128xf32>
      %32 = tpu.matmul %30, %31, %cst_26 {dimension_numbers = #tpu.dot_dimension_numbers<[1], [0], [0], [1], [0, 0, 1, 1], [], []>} : vector<16x128xbf16>, vector<128x128xbf16>, vector<16x128xf32> -> vector<16x128xf32>
      %c0_27 = arith.constant 0 : index
      %c0_28 = arith.constant 0 : index
      %33 = vector.load %arg8[%c0_27, %c0_28] : memref<1x128xf32, #tpu.memory_space<vmem>>, vector<1x128xf32>
      %34 = vector.broadcast %33 : vector<1x128xf32> to vector<16x128xf32>
      %35 = arith.addf %32, %34 : vector<16x128xf32>
      %c0_29 = arith.constant 0 : index
      %c0_30 = arith.constant 0 : index
      %c0_31 = arith.constant 0 : index
      %36 = vector.load %arg4[%c0_29, %c0_30, %c0_31] : memref<1x16x128xbf16, #tpu.memory_space<vmem>>, vector<1x16x128xbf16>
      %37 = vector.shape_cast %36 : vector<1x16x128xbf16> to vector<16x128xbf16>
      %c0_32 = arith.constant 0 : index
      %c0_33 = arith.constant 0 : index
      %38 = vector.load %arg9[%c0_32, %c0_33] : memref<128x128xbf16, #tpu.memory_space<vmem>>, vector<128x128xbf16>
      %cst_34 = arith.constant dense<0.000000e+00> : vector<16x128xf32>
      %39 = tpu.matmul %37, %38, %cst_34 {dimension_numbers = #tpu.dot_dimension_numbers<[1], [0], [0], [1], [0, 0, 1, 1], [], []>} : vector<16x128xbf16>, vector<128x128xbf16>, vector<16x128xf32> -> vector<16x128xf32>
      %c0_35 = arith.constant 0 : index
      %c0_36 = arith.constant 0 : index
      %40 = vector.load %arg10[%c0_35, %c0_36] : memref<1x128xf32, #tpu.memory_space<vmem>>, vector<1x128xf32>
      %41 = vector.broadcast %40 : vector<1x128xf32> to vector<16x128xf32>
      %42 = arith.addf %39, %41 : vector<16x128xf32>
      %43 = tpu.iota {dimensions = array<i32: 0>} : vector<16x128xi32>
      %c12_i32 = arith.constant 12 : i32
      %44 = vector.broadcast %c12_i32 : i32 to vector<16x128xi32>
      %45 = arith.cmpi slt, %43, %44 : vector<16x128xi32>
      %cst_37 = arith.constant 0.000000e+00 : f32
      %46 = vector.broadcast %cst_37 : f32 to vector<16x128xf32>
      %47 = arith.select %45, %42, %46 : vector<16x128xi1>, vector<16x128xf32>
      %48 = arith.truncf %47 : vector<16x128xf32> to vector<16x128xbf16>
      %c0_38 = arith.constant 0 : index
      %c0_39 = arith.constant 0 : index
      %49 = vector.load %arg11[%c0_38, %c0_39] : memref<128x128xbf16, #tpu.memory_space<vmem>>, vector<128x128xbf16>
      %cst_40 = arith.constant dense<0.000000e+00> : vector<16x128xf32>
      %50 = tpu.matmul %48, %49, %cst_40 {dimension_numbers = #tpu.dot_dimension_numbers<[1], [0], [0], [1], [0, 0, 1, 1], [], []>} : vector<16x128xbf16>, vector<128x128xbf16>, vector<16x128xf32> -> vector<16x128xf32>
      %51 = arith.truncf %35 : vector<16x128xf32> to vector<16x128xbf16>
      %c0_41 = arith.constant 0 : index
      %c0_42 = arith.constant 0 : index
      %52 = vector.load %arg14[%c0_41, %c0_42] : memref<16x128xbf16, #tpu.memory_space<vmem>>, vector<16x128xbf16>
      tpu.vector_store %arg14[%c0_41, %c0_42], %51 {strides = array<i32>} : memref<16x128xbf16, #tpu.memory_space<vmem>>, vector<16x128xbf16>,
      %53 = arith.truncf %50 : vector<16x128xf32> to vector<16x128xbf16>
      %c0_43 = arith.constant 0 : index
      %c0_44 = arith.constant 0 : index
      %54 = vector.load %arg15[%c0_43, %c0_44] : memref<16x128xbf16, #tpu.memory_space<vmem>>, vector<16x128xbf16>
      tpu.vector_store %arg15[%c0_43, %c0_44], %53 {strides = array<i32>} : memref<16x128xbf16, #tpu.memory_space<vmem>>, vector<16x128xbf16>,
    } else {
    }
    %c0 = arith.constant 0 : index
    %c0_1 = arith.constant 0 : index
    %c0_2 = arith.constant 0 : index
    %3 = vector.load %arg2[%c0, %c0_1, %c0_2] : memref<1x16x128xbf16, #tpu.memory_space<vmem>>, vector<1x16x128xbf16>
    %4 = vector.shape_cast %3 : vector<1x16x128xbf16> to vector<16x128xbf16>
    %c0_3 = arith.constant 0 : index
    %c0_4 = arith.constant 0 : index
    %5 = vector.load %arg5[%c0_3, %c0_4] : memref<128x128xbf16, #tpu.memory_space<vmem>>, vector<128x128xbf16>
    %cst = arith.constant dense<0.000000e+00> : vector<16x128xf32>
    %6 = tpu.matmul %4, %5, %cst {dimension_numbers = #tpu.dot_dimension_numbers<[1], [0], [0], [1], [0, 0, 1, 1], [], []>} : vector<16x128xbf16>, vector<128x128xbf16>, vector<16x128xf32> -> vector<16x128xf32>
    %c0_5 = arith.constant 0 : index
    %c0_6 = arith.constant 0 : index
    %7 = vector.load %arg6[%c0_5, %c0_6] : memref<1x128xf32, #tpu.memory_space<vmem>>, vector<1x128xf32>
    %8 = vector.broadcast %7 : vector<1x128xf32> to vector<16x128xf32>
    %9 = arith.addf %6, %8 : vector<16x128xf32>
    %10 = arith.truncf %9 : vector<16x128xf32> to vector<16x128xbf16>
    %c0_7 = arith.constant 0 : index
    %c0_8 = arith.constant 0 : index
    %11 = vector.load %arg14[%c0_7, %c0_8] : memref<16x128xbf16, #tpu.memory_space<vmem>>, vector<16x128xbf16>
    %cst_9 = arith.constant dense<0.000000e+00> : vector<16x16xf32>
    %12 = tpu.matmul %10, %11, %cst_9 {dimension_numbers = #tpu.dot_dimension_numbers<[1], [1], [0], [0], [0, 0, 1, 0], [], []>} : vector<16x128xbf16>, vector<16x128xbf16>, vector<16x16xf32> -> vector<16x16xf32>
    %cst_10 = arith.constant 5.000000e-01 : f32
    %13 = vector.broadcast %cst_10 : f32 to vector<16x16xf32>
    %14 = arith.mulf %13, %12 : vector<16x16xf32>
    %15 = math.tanh %14 : vector<16x16xf32>
    %cst_11 = arith.constant 5.000000e-01 : f32
    %16 = vector.broadcast %cst_11 : f32 to vector<16x16xf32>
    %17 = arith.mulf %16, %15 : vector<16x16xf32>
    %cst_12 = arith.constant 5.000000e-01 : f32
    %18 = vector.broadcast %cst_12 : f32 to vector<16x16xf32>
    %19 = arith.addf %17, %18 : vector<16x16xf32>
    %20 = arith.truncf %19 : vector<16x16xf32> to vector<16x16xbf16>
    %c0_13 = arith.constant 0 : index
    %c0_14 = arith.constant 0 : index
    %21 = vector.load %arg15[%c0_13, %c0_14] : memref<16x128xbf16, #tpu.memory_space<vmem>>, vector<16x128xbf16>
    %cst_15 = arith.constant dense<0.000000e+00> : vector<16x128xf32>
    %22 = tpu.matmul %20, %21, %cst_15 {dimension_numbers = #tpu.dot_dimension_numbers<[1], [0], [0], [1], [0, 0, 1, 1], [], []>} : vector<16x16xbf16>, vector<16x128xbf16>, vector<16x128xf32> -> vector<16x128xf32>
    %c0_16 = arith.constant 0 : index
    %c0_17 = arith.constant 0 : index
    %23 = vector.load %arg12[%c0_16, %c0_17] : memref<1x128xf32, #tpu.memory_space<vmem>>, vector<1x128xf32>
    %24 = vector.broadcast %23 : vector<1x128xf32> to vector<16x128xf32>
    %25 = arith.addf %22, %24 : vector<16x128xf32>
    %c0_18 = arith.constant 0 : index
    %c0_19 = arith.constant 0 : index
    %c0_20 = arith.constant 0 : index
    %26 = vector.load %arg13[%c0_18, %c0_19, %c0_20] : memref<1x16x128xf32, #tpu.memory_space<vmem>>, vector<1x16x128xf32>
    %27 = vector.shape_cast %26 : vector<1x16x128xf32> to vector<16x128xf32>
    %28 = vector.shape_cast %25 : vector<16x128xf32> to vector<1x16x128xf32>
    tpu.vector_store %arg13[%c0_18, %c0_19, %c0_20], %28 {strides = array<i32>} : memref<1x16x128xf32, #tpu.memory_space<vmem>>, vector<1x16x128xf32>,
    return
  }
  func.func @transform_0(%arg0: i32, %arg1: i32) -> (i32, i32, i32) {
    %c0_i32 = arith.constant 0 : i32
    %c0_i32_0 = arith.constant 0 : i32
    return %arg0, %arg1, %c0_i32 : i32, i32, i32
  }
  func.func @transform_1(%arg0: i32, %arg1: i32) -> (i32, i32, i32) {
    %c0_i32 = arith.constant 0 : i32
    %c0_i32_0 = arith.constant 0 : i32
    %c0_i32_1 = arith.constant 0 : i32
    return %arg0, %c0_i32, %c0_i32_0 : i32, i32, i32
  }
  func.func @transform_2(%arg0: i32, %arg1: i32) -> (i32, i32, i32) {
    %c0_i32 = arith.constant 0 : i32
    %c0_i32_0 = arith.constant 0 : i32
    %c0_i32_1 = arith.constant 0 : i32
    return %arg0, %c0_i32, %c0_i32_0 : i32, i32, i32
  }
  func.func @transform_3(%arg0: i32, %arg1: i32) -> (i32, i32) {
    %c0_i32 = arith.constant 0 : i32
    %c0_i32_0 = arith.constant 0 : i32
    %c0_i32_1 = arith.constant 0 : i32
    return %c0_i32, %c0_i32_0 : i32, i32
  }
  func.func @transform_4(%arg0: i32, %arg1: i32) -> (i32, i32) {
    %c0_i32 = arith.constant 0 : i32
    %c0_i32_0 = arith.constant 0 : i32
    %c0_i32_1 = arith.constant 0 : i32
    return %c0_i32, %c0_i32_0 : i32, i32
  }
  func.func @transform_5(%arg0: i32, %arg1: i32) -> (i32, i32) {
    %c0_i32 = arith.constant 0 : i32
    %c0_i32_0 = arith.constant 0 : i32
    %c0_i32_1 = arith.constant 0 : i32
    return %c0_i32, %c0_i32_0 : i32, i32
  }
  func.func @transform_6(%arg0: i32, %arg1: i32) -> (i32, i32) {
    %c0_i32 = arith.constant 0 : i32
    %c0_i32_0 = arith.constant 0 : i32
    %c0_i32_1 = arith.constant 0 : i32
    return %c0_i32, %c0_i32_0 : i32, i32
  }
  func.func @transform_7(%arg0: i32, %arg1: i32) -> (i32, i32) {
    %c0_i32 = arith.constant 0 : i32
    %c0_i32_0 = arith.constant 0 : i32
    %c0_i32_1 = arith.constant 0 : i32
    return %c0_i32, %c0_i32_0 : i32, i32
  }
  func.func @transform_8(%arg0: i32, %arg1: i32) -> (i32, i32) {
    %c0_i32 = arith.constant 0 : i32
    %c0_i32_0 = arith.constant 0 : i32
    %c0_i32_1 = arith.constant 0 : i32
    return %c0_i32, %c0_i32_0 : i32, i32
  }
  func.func @transform_9(%arg0: i32, %arg1: i32) -> (i32, i32) {
    %c0_i32 = arith.constant 0 : i32
    %c0_i32_0 = arith.constant 0 : i32
    %c0_i32_1 = arith.constant 0 : i32
    return %c0_i32, %c0_i32_0 : i32, i32
  }
  func.func @transform_10(%arg0: i32, %arg1: i32) -> (i32, i32) {
    %c0_i32 = arith.constant 0 : i32
    %c0_i32_0 = arith.constant 0 : i32
    %c0_i32_1 = arith.constant 0 : i32
    return %c0_i32, %c0_i32_0 : i32, i32
  }
  func.func @transform_11(%arg0: i32, %arg1: i32) -> (i32, i32, i32) {
    %c0_i32 = arith.constant 0 : i32
    %c0_i32_0 = arith.constant 0 : i32
    return %arg0, %arg1, %c0_i32 : i32, i32, i32
  }
}

</mosaic_0001>

<bundles_post_ra>
// kernel: tpu_custom_call.1
= control target key start
LH: loop header
LB: loop body
LE: loop exit
PB: predicated region body
PF: predicated region fallthrough
CT: control target
= control target key end

     0   :  { %s2872_s0 = inlined_call_operand.hbm [shape: bf16[2,16,128], index: 0, kind: input, shape index: {}]   ;;  %s2873_s1 = inlined_call_operand.hbm [shape: bf16[2,16,128], index: 1, kind: input, shape index: {}]   ;;  %s2874_s2 = inlined_call_operand.hbm [shape: bf16[2,16,128], index: 2, kind: input, shape index: {}]   ;;  %s2875_s3 = inlined_call_operand.hbm [shape: bf16[128,128], index: 3, kind: input, shape index: {}]   ;;  %s2876_s4 = inlined_call_operand.hbm [shape: f32[1,128], index: 4, kind: input, shape index: {}]   ;;  %s2877_s5 = inlined_call_operand.hbm [shape: bf16[128,128], index: 5, kind: input, shape index: {}]   ;;  %s2878_s6 = inlined_call_operand.hbm [shape: f32[1,128], index: 6, kind: input, shape index: {}]   ;;  %s2879_s7 = inlined_call_operand.hbm [shape: bf16[128,128], index: 7, kind: input, shape index: {}]   ;;  %s2880_s8 = inlined_call_operand.hbm [shape: f32[1,128], index: 8, kind: input, shape index: {}]   ;;  %s2881_s9 = inlined_call_operand.hbm [shape: bf16[128,128], index: 9, kind: input, shape index: {}]   ;;  %s2882_s10 = inlined_call_operand.hbm [shape: f32[1,128], index: 10, kind: input, shape index: {}]   ;;  %s2883_s11 = inlined_call_operand.hbm [shape: f32[2,16,128], index: 11, kind: output, shape index: {}]  }
   0x1   :  { %2911 = sst [smem:[#allocation38_spill]] %s2872_s0 }
   0x2   :  { %2912 = sst [smem:[#allocation39_spill]] %s2873_s1 }
   0x3   :  { %2913 = sst [smem:[#allocation40_spill]] %s2874_s2 }
   0x4   :  { %2914 = sst [smem:[#allocation41_spill]] %s2875_s3 }
   0x5   :  { %2915 = sst [smem:[#allocation42_spill]] %s2877_s5 }
   0x6   :  { %2916 = sst [smem:[#allocation43_spill]] %s2879_s7 }
   0x7   :  { %2917 = sst [smem:[#allocation44_spill]] %s2881_s9 }
   0x8   :  { %2918 = sst [smem:[#allocation45_spill]] %s2883_s11 }
   0x9   :  { %16 = vsyncpa [#allocation5], 0 }
   0xa   :  { %18 = vsyncpa [#allocation5 + $0x1], 0 }
   0xb   :  { %19 = vsyncpa [#allocation8], 0 }
   0xc   :  { %21 = vsyncpa [#allocation8 + $0x1], 0 }
   0xd   :  { %22 = vsyncpa [#allocation11], 0 }
   0xe   :  { %23 = vsyncpa [#allocation14], 0 }
   0xf   :  { %24 = vsyncpa [#allocation17], 0 }
  0x10   :  { %25 = vsyncpa [#allocation20], 0 }
  0x11   :  { %26 = vsyncpa [#allocation6], 0 }
  0x12   :  { %28 = vsyncpa [#allocation6 + $0x1], 0  ;;  %s2335_s17 = smov 0   ;;  %s2337_s18 = smov 0  }
  0x13   :  { %s2339_s19 = smov 0   ;;  %s2341_s20 = smov 0  }
  0x14   :  { %s2343_s21 = smov 0   ;;  %s2345_s22 = smov 0  }
  0x15 LB: > { %2919 = sst [smem:[#allocation30_spill]] %s2234_s17  ;;  %s2366_s23 = sadd.s32 4294967295, %s2254_s22   ;;  %s2254_s22 = sphi %s2345_s22, %s34_s22   ;;  %s2250_s21 = sphi %s2343_s21, %s2972_s21   ;;  %s2246_s20 = sphi %s2341_s20, %s2971_s20   ;;  %s2242_s19 = sphi %s2339_s19, %s2975_s19   ;;  %s2238_s18 = sphi %s2337_s18, %s2974_s18   ;;  %s2234_s17 = sphi %s2335_s17, %s2973_s17  }
  0x16   : > { %2920 = sst [smem:[#allocation31_spill]] %s2246_s20  ;;  %p1423_p0 = scmp.ge.s32.totalorder %s2254_s22, 1 }
  0x17   : > { %2921 = sst [smem:[#allocation32_spill]] %s2250_s21  ;;  %p2888_p1 = scmp.eq.s32.totalorder %s2366_s23, 0 }
  0x18   : > { %2922 = sst [smem:[#allocation33_spill]] %s2254_s22  ;;  %p327_p2 = scmp.lt.s32.totalorder %s2254_s22, 3 }
  0x19   : > { %s2256_s25 = smov [#allocation10]   ;;  %s2257_s28 = smov [#allocation13]  }
  0x1a   : > { %p2371_p3 = pnand %p1423_p0, %p327_p2  ;;  %s339_s26 = sshll.u32 %s2256_s25, 4  ;;  %s2375_s26 = int_to_ptr.vmem [resolvable:$true] %s339_s26 }
  0x1b   : > { %s363_s29 = sshll.u32 %s2257_s28, 4  ;;  %s2258_s30 = smov [#allocation16]   ;;  %s2386_s29 = int_to_ptr.vmem [resolvable:$true] %s363_s29 }
  0x1c   : > { %s2923_s24 = scalar_select %p2371_p3, 1, 0 }
  0x1d   : > { %p1679_p4 = pneg %p2371_p3  ;;  %s2388_s12 = sshll.u32 %s2258_s30, 4  ;;  %s388_s12 = int_to_ptr.vmem [resolvable:$true] %s2388_s12 }
  0x1e   : > { %2924 = sst [smem:[#allocation34_spill]] %s2923_s24  ;;  %s2926_s3 = sld [smem:[#allocation41_spill]] }
  0x1f   : > { %p2382_p6 = pnand %p1679_p4, %p2888_p1 }
  0x21   : > { %s2925_s27 = scalar_select %p2382_p6, 1, 0 }
  0x22   : > { %p2398_p8 = pneg %p2382_p6 }
  0x24   : > { %s1838_s15 = scalar_lea.hbm %s2926_s3, 1024 }
  0x25   : > { %p1839_p7 = scmp.ne.s32.totalorder %s2926_s3, %s1838_s15  ;;  %p1845_p11 = scmp.lt.u32.totalorder %s1838_s15, %s2926_s3 }
  0x26   : > { %s2927_s11 = scalar_select %p2398_p8, 1, 0 }
  0x27   : > { %p1841_p9 = pnand %p2398_p8, %p1839_p7 }
  0x29   : > { %p1842_p10 = pneg %p1841_p9 }
  0x2b   : > { %p1847_p12 = pnand %p1845_p11, %p1842_p10 }
  0x2d   : > { %1850 = shalt.err (!%p1847_p12)
}
  0x2e   : > { %s1851_s13 = scalar_lea.vmem %s2375_s26, 1024  ;;  %p1859_p4 = scmp.lt.s32.totalorder %s2375_s26, %s2375_s26 }
  0x2f   : > { %p1852_p13 = scmp.ne.s32.totalorder %s2375_s26, %s1851_s13  ;;  %p1860_p5 = scmp.lt.s32.totalorder %s1851_s13, %s1851_s13 }
  0x31   : > { %p1854_p0 = pnand %p1852_p13, %p2398_p8  ;;  %p1861_p7 = por %p1860_p5, %p1859_p4 }
  0x33   : > { %p1855_p2 = pneg %p1854_p0 }
  0x35   : > { %p1862_p9 = pnand %p1861_p7, %p1855_p2 }
  0x37   : > { %1865 = shalt.err (!%p1862_p9)
}
  0x38   : > { %s2890_s14 = smov 64   ;;  %s2892_s15 = smov 4  }
  0x39   : > { %1682 = dma.hbm_to_vmem [thread:$0]  (!%p2382_p6), %s2926_s3, 1024, %s2375_s26, [#allocation11], %s2890_s14, %s2890_s14, %s2892_s15  }
  0x3a   : > { %s2928_s5 = sld [smem:[#allocation42_spill]] }
  0x40   : > { %s1866_s13 = scalar_lea.hbm %s2928_s5, 1024 }
  0x41   : > { %p1867_p5 = scmp.ne.s32.totalorder %s2928_s5, %s1866_s13  ;;  %p1873_p12 = scmp.lt.u32.totalorder %s1866_s13, %s2928_s5 }
  0x43   : > { %p1869_p10 = pnand %p1867_p5, %p2398_p8 }
  0x45   : > { %p1870_p11 = pneg %p1869_p10 }
  0x47   : > { %p1875_p13 = pnand %p1873_p12, %p1870_p11 }
  0x49   : > { %1878 = shalt.err (!%p1875_p13)
}
  0x4a   : > { %s1879_s26 = scalar_lea.vmem %s2386_s29, 1024  ;;  %p1887_p7 = scmp.lt.s32.totalorder %s2386_s29, %s2386_s29 }
  0x4b   : > { %p1880_p0 = scmp.ne.s32.totalorder %s2386_s29, %s1879_s26  ;;  %p1888_p9 = scmp.lt.s32.totalorder %s1879_s26, %s1879_s26 }
  0x4d   : > { %p1882_p2 = pnand %p1880_p0, %p2398_p8  ;;  %p1889_p5 = por %p1888_p9, %p1887_p7 }
  0x4f   : > { %p1883_p4 = pneg %p1882_p2 }
  0x51   : > { %p1890_p10 = pnand %p1889_p5, %p1883_p4 }
  0x53   : > { %1893 = shalt.err (!%p1890_p10)
}
  0x54   : > { %1688 = dma.hbm_to_vmem [thread:$0]  (!%p2382_p6), %s2928_s5, 1024, %s2386_s29, [#allocation14], %s2890_s14, %s2890_s14, %s2892_s15  }
  0x55   : > { %s2929_s7 = sld [smem:[#allocation43_spill]] }
  0x5b   : > { %s1894_s16 = scalar_lea.hbm %s2929_s7, 1024 }
  0x5c   : > { %p1895_p11 = scmp.ne.s32.totalorder %s2929_s7, %s1894_s16  ;;  %p1901_p0 = scmp.lt.u32.totalorder %s1894_s16, %s2929_s7 }
  0x5e   : > { %p1897_p12 = pnand %p1895_p11, %p2398_p8 }
  0x60   : > { %p1898_p13 = pneg %p1897_p12 }
  0x62   : > { %p1903_p2 = pnand %p1901_p0, %p1898_p13 }
  0x64   : > { %1906 = shalt.err (!%p1903_p2)
}
  0x65   : > { %s1907_s26 = scalar_lea.vmem %s388_s12, 1024  ;;  %p1915_p5 = scmp.lt.s32.totalorder %s388_s12, %s388_s12 }
  0x66   : > { %p1908_p4 = scmp.ne.s32.totalorder %s388_s12, %s1907_s26  ;;  %p1916_p10 = scmp.lt.s32.totalorder %s1907_s26, %s1907_s26 }
  0x68   : > { %p1910_p7 = pnand %p1908_p4, %p2398_p8  ;;  %p1917_p1 = por %p1916_p10, %p1915_p5 }
  0x6a   : > { %p1911_p9 = pneg %p1910_p7 }
  0x6c   : > { %p1918_p3 = pnand %p1917_p1, %p1911_p9 }
  0x6e   : > { %1921 = shalt.err (!%p1918_p3)
}
  0x6f   : > { %1694 = dma.hbm_to_vmem [thread:$0]  (!%p2382_p6), %s2929_s7, 1024, %s388_s12, [#allocation17], %s2890_s14, %s2890_s14, %s2892_s15  }
  0x70   : > { %s2261_s2 = smov [#allocation19]   ;;  %s2930_s9 = sld [smem:[#allocation44_spill]] }
  0x71   : > { %s411_s20 = sshll.u32 %s2261_s2, 4  ;;  %s412_s20 = int_to_ptr.vmem [resolvable:$true] %s411_s20 }
  0x76   : > { %s1922_s25 = scalar_lea.hbm %s2930_s9, 1024 }
  0x77   : > { %p1923_p1 = scmp.ne.s32.totalorder %s2930_s9, %s1922_s25  ;;  %p1929_p12 = scmp.lt.u32.totalorder %s1922_s25, %s2930_s9 }
  0x79   : > { %p1925_p3 = pnand %p1923_p1, %p2398_p8 }
  0x7b   : > { %p1926_p11 = pneg %p1925_p3 }
  0x7d   : > { %p1931_p13 = pnand %p1929_p12, %p1926_p11 }
  0x7f   : > { %1934 = shalt.err (!%p1931_p13)
}
  0x80   : > { %s1935_s12 = scalar_lea.vmem %s412_s20, 1024  ;;  %p1943_p7 = scmp.lt.s32.totalorder %s412_s20, %s412_s20 }
  0x81   : > { %p1936_p0 = scmp.ne.s32.totalorder %s412_s20, %s1935_s12  ;;  %p1944_p9 = scmp.lt.s32.totalorder %s1935_s12, %s1935_s12 }
  0x83   : > { %p1938_p2 = pnand %p1936_p0, %p2398_p8  ;;  %p1945_p5 = por %p1944_p9, %p1943_p7 }
  0x85   : > { %p1939_p4 = pneg %p1938_p2 }
  0x87   : > { %p1946_p10 = pnand %p1945_p5, %p1939_p4 }
  0x89   : > { %1949 = shalt.err (!%p1946_p10)
}
  0x8a   : > { %1700 = dma.hbm_to_vmem [thread:$0]  (!%p2382_p6), %s2930_s9, 1024, %s412_s20, [#allocation20], %s2890_s14, %s2890_s14, %s2892_s15  }
  0x8b   : > { %s1422_s2 = sadd.s32 4294967294, %s2254_s22   ;;  %s46_s24 = sadd.s32 1, %s2250_s21 }
  0x8c   : > { %p48_p1 = scmp.ge.s32.totalorder %s46_s24, 2  ;;  %s55_s16 = sadd.s32 1, %s2242_s19 }
  0x8d   : > { %p62_p3 = scmp.ne.s32.totalorder %s2242_s19, %s2238_s18  ;;  %p63_p11 = scmp.eq.s32.totalorder %s2254_s22, 0 }
  0x8e   : > { %s2977_s24 = smov (%p48_p1, %s46_s24), 0  ;;  %p68_p13 = scmp.ne.s32.totalorder %s2238_s18, %s2234_s17 }
  0x8f   : > { %2931 = sst [smem:[#allocation35_spill]] %s2977_s24  ;;  %p2499_p12 = por %p63_p11, %p62_p3 }
  0x90   : > { %s50_s20 = ssub.s32 %s2250_s21, %s2977_s24  ;;  %p314_p0 = scmp.eq.s32.totalorder %s2366_s23, 1 }
  0x91   : > { %p53_p2 = scmp.eq.s32.totalorder %s50_s20, 0  ;;  %p2933_p4 = scmp.eq.s32.totalorder %s2366_s23, 0 }
  0x92   : > { %p2514_p9 = por %p314_p0, %p62_p3  ;;  %p320_p5 = scmp.eq.s32.totalorder %s1422_s2, 1 }
  0x93   : > { %p2510_p7 = por %p2933_p4, %p68_p13  ;;  %p1726_p1 = scmp.lt.s32.totalorder %s2254_s22, 2 }
  0x94   : > { %s2935_s30 = scalar_select %p2514_p9, 1, 0 }
  0x95   : > { %s2934_s28 = scalar_select %p2510_p7, 1, 0 }
  0x96   : > { %s2519_s13 = scalar_select %p53_p2, %s2242_s19, %s55_s16  }
  0x97   : > { %p2521_p10 = por %p320_p5, %p68_p13  ;;  %s2894_s12 = sand.u32 1, %s2242_s19  }
  0x98   : > { %2936 = sst [smem:[#allocation36_spill]] %s2519_s13  ;;  %s2528_s29 = sshll.u32 %s2250_s21, 7 }
  0x99   : > { %s2937_s26 = scalar_select %p2521_p10, 1, 0 }
  0x9a   : > { %s2532_s0 = sshll.u32 %s2894_s12, 3  ;;  %p2536_p3 = pnand %p1726_p1, %p2499_p12 }
  0x9b   : > { %2938 = sst [smem:[#allocation37_spill]] %s2937_s26  ;;  %s459_s2 = sand.u32 1, %s2254_s22  }
  0x9c   : > { %s2939_s20 = scalar_select %p2536_p3, 1, 0 }
  0x9d   : > { %s2940_s1 = sld [smem:[#allocation39_spill]]  ;;  %s463_s3 = scalar_lea.vmem [#allocation7], %s2532_s0 }
  0x9e   : > { %s470_s12 = sshll.u32 %s463_s3, 4  ;;  %s2550_s25 = scalar_lea.sflag [#allocation8], %s459_s2  ;;  %s2548_s12 = int_to_ptr.vmem [resolvable:$true] %s470_s12 }
  0x9f   : > { %p2556_p12 = pneg %p2536_p3 }
  0xa1   : > { %s2941_s7 = scalar_select %p2556_p12, 1, 0 }
  0xa3   : > { %s2545_s15 = scalar_lea.hbm %s2940_s1, %s2528_s29  ;;  %s1955_s9 = scalar_lea.hbm %s2940_s1, 256 }
  0xa4   : > { %s1950_s5 = scalar_lea.hbm %s2545_s15, 128  ;;  %p1956_p2 = scmp.lt.u32.totalorder %s2545_s15, %s2940_s1 }
  0xa5   : > { %p1951_p11 = scmp.ne.s32.totalorder %s2545_s15, %s1950_s5  ;;  %p1957_p4 = scmp.lt.u32.totalorder %s1955_s9, %s1950_s5 }
  0xa6   : > { %p1959_p1 = scmp.lt.u32.totalorder %s1950_s5, %s2545_s15 }
  0xa7   : > { %p1953_p13 = pnand %p2556_p12, %p1951_p11  ;;  %p1958_p5 = por %p1957_p4, %p1956_p2 }
  0xa9   : > { %p1954_p0 = pneg %p1953_p13  ;;  %p1960_p10 = por %p1959_p1, %p1958_p5 }
  0xab   : > { %p1961_p9 = pnand %p1960_p10, %p1954_p0 }
  0xad   : > { %1964 = shalt.err (!%p1961_p9)
}
  0xae   : > { %s1965_s2 = scalar_lea.vmem %s2548_s12, 128  ;;  %s2262_s14 = smov [#allocation7]  }
  0xaf   : > { %p1966_p11 = scmp.ne.s32.totalorder %s2548_s12, %s1965_s2  ;;  %s1970_s16 = sshll.u32 %s2262_s14, 4  ;;  %s1971_s16 = int_to_ptr.vmem [resolvable:$false] %s1970_s16 }
  0xb0   : > { %s1972_s24 = scalar_lea.vmem %s1971_s16, 256  ;;  %p1973_p6 = scmp.lt.s32.totalorder %s2548_s12, %s1971_s16 }
  0xb1   : > { %p1968_p13 = pnand %p1966_p11, %p2556_p12  ;;  %p1974_p8 = scmp.lt.s32.totalorder %s1972_s24, %s1965_s2 }
  0xb3   : > { %p1969_p7 = pneg %p1968_p13  ;;  %p1975_p2 = por %p1974_p8, %p1973_p6 }
  0xb5   : > { %p1976_p4 = pnand %p1975_p2, %p1969_p7 }
  0xb7   : > { %1979 = shalt.err (!%p1976_p4)
}
  0xb8   : > { %s2942_s5 = smov 4   ;;  %s2943_s9 = smov 64  }
  0xb9   : > { %1710 = dma.hbm_to_vmem [thread:$0]  (!%p2536_p3), %s2545_s15, 128, %s2548_s12, %s2550_s25, %s2943_s9, %s2943_s9, %s2942_s5  }
  0xba   : > { %s2263_s3 = smov [#allocation12]   ;;  %s2264_s14 = smov [#allocation15]  }
  0xbb   : > { %s353_s1 = sshll.u32 %s2263_s3, 4  ;;  %s377_s21 = sshll.u32 %s2264_s14, 4  ;;  %s354_s1 = int_to_ptr.vmem [resolvable:$true] %s353_s1  ;;  %s378_s21 = int_to_ptr.vmem [resolvable:$true] %s377_s21 }
  0xbc   : > { %s1980_s24 = scalar_lea.hbm %s2876_s4, 16  ;;  %p2944_p8 = scmp.ne.s32.totalorder %s2927_s11, 0 }
  0xbd   : > { %p1981_p6 = scmp.ne.s32.totalorder %s2876_s4, %s1980_s24  ;;  %p1987_p10 = scmp.lt.u32.totalorder %s1980_s24, %s2876_s4 }
  0xbf   : > { %p1983_p7 = pnand %p1981_p6, %p2944_p8 }
  0xc1   : > { %p1984_p9 = pneg %p1983_p7 }
  0xc3   : > { %p1989_p0 = pnand %p1987_p10, %p1984_p9 }
  0xc5   : > { %1992 = shalt.err (!%p1989_p0)
}
  0xc6   : > { %s1993_s15 = scalar_lea.vmem %s354_s1, 16  ;;  %s2000_s12 = scalar_lea.vmem %s354_s1, 32 }
  0xc7   : > { %p1994_p5 = scmp.ne.s32.totalorder %s354_s1, %s1993_s15  ;;  %p2001_p13 = scmp.lt.s32.totalorder %s354_s1, %s354_s1 }
  0xc8   : > { %p2002_p2 = scmp.lt.s32.totalorder %s2000_s12, %s1993_s15 }
  0xc9   : > { %p1996_p1 = pnand %p1994_p5, %p2944_p8 }
  0xca   : > { %p2003_p4 = por %p2002_p2, %p2001_p13 }
  0xcb   : > { %p1997_p11 = pneg %p1996_p1 }
  0xcd   : > { %p2004_p3 = pnand %p2003_p4, %p1997_p11 }
  0xcf   : > { %2007 = shalt.err (!%p2004_p3)
}
  0xd0   : > { %p2945_p6 = scmp.ne.s32.totalorder %s2925_s27, 0  ;;  %s2008_s3 = scalar_lea.hbm %s2878_s6, 16 }
  0xd1   : > { %p2009_p7 = scmp.ne.s32.totalorder %s2878_s6, %s2008_s3  ;;  %p2015_p3 = scmp.lt.u32.totalorder %s2008_s3, %s2878_s6 }
  0xd2   : > { %1685 = dma.hbm_to_vmem [thread:$0]  (!%p2945_p6), %s2876_s4, 16, %s354_s1, [#allocation11]  }
  0xd3   : > { %p2011_p9 = pnand %p2009_p7, %p2944_p8 }
  0xd5   : > { %p2012_p10 = pneg %p2011_p9 }
  0xd7   : > { %p2017_p0 = pnand %p2015_p3, %p2012_p10 }
  0xd9   : > { %2020 = shalt.err (!%p2017_p0)
}
  0xda   : > { %s2021_s15 = scalar_lea.vmem %s378_s21, 16  ;;  %s2028_s1 = scalar_lea.vmem %s378_s21, 32 }
  0xdb   : > { %p2022_p5 = scmp.ne.s32.totalorder %s378_s21, %s2021_s15  ;;  %p2029_p13 = scmp.lt.s32.totalorder %s378_s21, %s378_s21 }
  0xdc   : > { %p2030_p2 = scmp.lt.s32.totalorder %s2028_s1, %s2021_s15 }
  0xdd   : > { %p2024_p1 = pnand %p2022_p5, %p2944_p8 }
  0xde   : > { %p2031_p4 = por %p2030_p2, %p2029_p13 }
  0xdf   : > { %p2025_p11 = pneg %p2024_p1 }
  0xe1   : > { %p2032_p12 = pnand %p2031_p4, %p2025_p11 }
  0xe3   : > { %2035 = shalt.err (!%p2032_p12)
}
  0xe4   : > { %1691 = dma.hbm_to_vmem [thread:$0]  (!%p2945_p6), %s2878_s6, 16, %s378_s21, [#allocation14]  }
  0xe5   : > { %s2265_s13 = smov [#allocation18]   ;;  %s2266_s26 = smov [#allocation21]  }
  0xe6   : > { %s401_s17 = sshll.u32 %s2265_s13, 4  ;;  %s425_s3 = sshll.u32 %s2266_s26, 4  ;;  %s402_s17 = int_to_ptr.vmem [resolvable:$true] %s401_s17  ;;  %s426_s3 = int_to_ptr.vmem [resolvable:$true] %s425_s3 }
  0xe7   : > { %s2036_s2 = scalar_lea.hbm %s2880_s8, 16 }
  0xe8   : > { %p2037_p12 = scmp.ne.s32.totalorder %s2880_s8, %s2036_s2  ;;  %p2043_p10 = scmp.lt.u32.totalorder %s2036_s2, %s2880_s8 }
  0xea   : > { %p2039_p7 = pnand %p2037_p12, %p2944_p8 }
  0xec   : > { %p2040_p9 = pneg %p2039_p7 }
  0xee   : > { %p2045_p3 = pnand %p2043_p10, %p2040_p9 }
  0xf0   : > { %2048 = shalt.err (!%p2045_p3)
}
  0xf1   : > { %s2049_s21 = scalar_lea.vmem %s402_s17, 16  ;;  %s2056_s22 = scalar_lea.vmem %s402_s17, 32 }
  0xf2   : > { %p2050_p0 = scmp.ne.s32.totalorder %s402_s17, %s2049_s21  ;;  %p2057_p11 = scmp.lt.s32.totalorder %s402_s17, %s402_s17 }
  0xf3   : > { %p2058_p13 = scmp.lt.s32.totalorder %s2056_s22, %s2049_s21 }
  0xf4   : > { %p2052_p5 = pnand %p2050_p0, %p2944_p8 }
  0xf5   : > { %p2059_p2 = por %p2058_p13, %p2057_p11 }
  0xf6   : > { %p2053_p1 = pneg %p2052_p5 }
  0xf8   : > { %p2060_p4 = pnand %p2059_p2, %p2053_p1 }
  0xfa   : > { %2063 = shalt.err (!%p2060_p4)
}
  0xfb   : > { %1697 = dma.hbm_to_vmem [thread:$0]  (!%p2945_p6), %s2880_s8, 16, %s402_s17, [#allocation17]  }
  0xfc   : > { %s2064_s2 = scalar_lea.hbm %s2882_s10, 16 }
  0xfd   : > { %p2065_p12 = scmp.ne.s32.totalorder %s2882_s10, %s2064_s2  ;;  %p2071_p10 = scmp.lt.u32.totalorder %s2064_s2, %s2882_s10 }
  0xff   : > { %p2067_p7 = pnand %p2065_p12, %p2944_p8 }
 0x101   : > { %p2068_p9 = pneg %p2067_p7 }
 0x103   : > { %p2073_p3 = pnand %p2071_p10, %p2068_p9 }
 0x105   : > { %2076 = shalt.err (!%p2073_p3)
}
 0x106   : > { %s2077_s21 = scalar_lea.vmem %s426_s3, 16  ;;  %s2084_s17 = scalar_lea.vmem %s426_s3, 32 }
 0x107   : > { %p2078_p0 = scmp.ne.s32.totalorder %s426_s3, %s2077_s21  ;;  %p2085_p11 = scmp.lt.s32.totalorder %s426_s3, %s426_s3 }
 0x108   : > { %p2086_p13 = scmp.lt.s32.totalorder %s2084_s17, %s2077_s21 }
 0x109   : > { %p2080_p5 = pnand %p2078_p0, %p2944_p8 }
 0x10a   : > { %p2087_p2 = por %p2086_p13, %p2085_p11 }
 0x10b   : > { %p2081_p1 = pneg %p2080_p5 }
 0x10d   : > { %p2088_p4 = pnand %p2087_p2, %p2081_p1 }
 0x10f   : > { %2091 = shalt.err (!%p2088_p4)
}
 0x110   : > { %1703 = dma.hbm_to_vmem [thread:$0]  (!%p2945_p6), %s2882_s10, 16, %s426_s3, [#allocation20]  }
 0x111   : > { %s2946_s14 = sld [smem:[#allocation38_spill]]  ;;  %s440_s2 = scalar_lea.vmem [#allocation4], %s2532_s0 }
 0x112   : > { %s449_s27 = sshll.u32 %s440_s2, 4  ;;  %s2947_s1 = sld [smem:[#allocation40_spill]]  ;;  %s2662_s27 = int_to_ptr.vmem [resolvable:$true] %s449_s27 }
 0x113   : > { %s2948_s21 = sand.u32 1, %s2242_s19   ;;  %p2949_p6 = scmp.ne.s32.totalorder %s2941_s7, 0 }
 0x114   : > { %s2672_s3 = scalar_lea.sflag [#allocation5], %s2948_s21 }
 0x117   : > { %s2659_s16 = scalar_lea.hbm %s2946_s14, %s2528_s29  ;;  %s2097_s11 = scalar_lea.hbm %s2946_s14, 256 }
 0x118   : > { %s2668_s12 = scalar_lea.hbm %s2947_s1, %s2528_s29  ;;  %s2092_s17 = scalar_lea.hbm %s2659_s16, 128 }
 0x119   : > { %p2093_p8 = scmp.ne.s32.totalorder %s2659_s16, %s2092_s17  ;;  %p2098_p9 = scmp.lt.u32.totalorder %s2659_s16, %s2946_s14 }
 0x11a   : > { %p2099_p10 = scmp.lt.u32.totalorder %s2097_s11, %s2092_s17  ;;  %p2101_p0 = scmp.lt.u32.totalorder %s2092_s17, %s2659_s16 }
 0x11b   : > { %p2095_p12 = pnand %p2093_p8, %p2949_p6 }
 0x11c   : > { %p2100_p3 = por %p2099_p10, %p2098_p9 }
 0x11d   : > { %p2096_p7 = pneg %p2095_p12 }
 0x11e   : > { %p2102_p5 = por %p2101_p0, %p2100_p3 }
 0x120   : > { %p2103_p1 = pnand %p2102_p5, %p2096_p7 }
 0x122   : > { %2106 = shalt.err (!%p2103_p1)
}
 0x123   : > { %s2107_s29 = scalar_lea.vmem %s2662_s27, 128  ;;  %s2267_s24 = smov [#allocation4]  }
 0x124   : > { %p2108_p11 = scmp.ne.s32.totalorder %s2662_s27, %s2107_s29  ;;  %s2112_s15 = sshll.u32 %s2267_s24, 4  ;;  %s2113_s15 = int_to_ptr.vmem [resolvable:$false] %s2112_s15 }
 0x125   : > { %s2114_s21 = scalar_lea.vmem %s2113_s15, 256  ;;  %p2115_p4 = scmp.lt.s32.totalorder %s2662_s27, %s2113_s15 }
 0x126   : > { %p2110_p13 = pnand %p2108_p11, %p2949_p6  ;;  %p2116_p8 = scmp.lt.s32.totalorder %s2114_s21, %s2107_s29 }
 0x128   : > { %p2111_p2 = pneg %p2110_p13  ;;  %p2117_p12 = por %p2116_p8, %p2115_p4 }
 0x12a   : > { %p2118_p9 = pnand %p2117_p12, %p2111_p2 }
 0x12c   : > { %2121 = shalt.err (!%p2118_p9)
}
 0x12d   : > { %p2950_p7 = scmp.ne.s32.totalorder %s2939_s20, 0  ;;  %s484_s17 = scalar_lea.vmem [#allocation9], %s2532_s0 }
 0x12e   : > { %s491_s22 = sshll.u32 %s484_s17, 4  ;;  %s2122_s13 = scalar_lea.hbm %s2668_s12, 128  ;;  %s2700_s22 = int_to_ptr.vmem [resolvable:$true] %s491_s22 }
 0x12f   : > { %1707 = dma.hbm_to_vmem [thread:$0]  (!%p2950_p7), %s2659_s16, 128, %s2662_s27, %s2672_s3, %s2943_s9, %s2943_s9, %s2942_s5  }
 0x130   : > { %p2123_p10 = scmp.ne.s32.totalorder %s2668_s12, %s2122_s13  ;;  %s2127_s2 = scalar_lea.hbm %s2947_s1, 256 }
 0x131   : > { %p2128_p5 = scmp.lt.u32.totalorder %s2668_s12, %s2947_s1  ;;  %p2129_p1 = scmp.lt.u32.totalorder %s2127_s2, %s2122_s13 }
 0x132   : > { %p2125_p3 = pnand %p2123_p10, %p2949_p6  ;;  %p2131_p13 = scmp.lt.u32.totalorder %s2122_s13, %s2668_s12 }
 0x133   : > { %p2130_p11 = por %p2129_p1, %p2128_p5 }
 0x134   : > { %p2126_p0 = pneg %p2125_p3 }
 0x135   : > { %p2132_p2 = por %p2131_p13, %p2130_p11 }
 0x137   : > { %p2133_p4 = pnand %p2132_p2, %p2126_p0 }
 0x139   : > { %2136 = shalt.err (!%p2133_p4)
}
 0x13a   : > { %s2137_s0 = scalar_lea.vmem %s2700_s22, 128  ;;  %s2268_s16 = smov [#allocation9]  }
 0x13b   : > { %p2138_p8 = scmp.ne.s32.totalorder %s2700_s22, %s2137_s0  ;;  %s2142_s27 = sshll.u32 %s2268_s16, 4  ;;  %s2143_s27 = int_to_ptr.vmem [resolvable:$false] %s2142_s27 }
 0x13c   : > { %s2144_s3 = scalar_lea.vmem %s2143_s27, 256  ;;  %p2145_p10 = scmp.lt.s32.totalorder %s2700_s22, %s2143_s27 }
 0x13d   : > { %p2140_p12 = pnand %p2138_p8, %p2949_p6  ;;  %p2146_p3 = scmp.lt.s32.totalorder %s2144_s3, %s2137_s0 }
 0x13f   : > { %p2141_p9 = pneg %p2140_p12  ;;  %p2147_p5 = por %p2146_p3, %p2145_p10 }
 0x141   : > { %p2148_p1 = pnand %p2147_p5, %p2141_p9 }
 0x143   : > { %2151 = shalt.err (!%p2148_p1)
}
 0x144   : > { %1713 = dma.hbm_to_vmem [thread:$0]  (!%p2950_p7), %s2668_s12, 128, %s2700_s22, %s2550_s25, %s2943_s9, %s2943_s9, %s2942_s5  }
 0x145   : > { %s2951_s7 = sld [smem:[#allocation34_spill]] }
 0x14b   : > { %p2952_p6 = scmp.ne.s32.totalorder %s2951_s7, 0 }
 0x14c   : > { %s2730_s15 = sand.u32 (!%p2952_p6), 1, %s2238_s18   ;;  %p2953_p0 = scmp.ne.s32.totalorder (!%p2952_p6), %s2934_s28, 0 }
 0x14d   : > { %503 = sbr.rel (%p2952_p6) target bundleno = 1105 (0x451), region = 64  ;;  %s2733_s21 = sshll.u32 (!%p2952_p6), %s2730_s15, 3 }
 0x14e   : > { %s506_s20 = scalar_lea.sflag (!%p2952_p6), [#allocation5], %s2730_s15  ;;  %s509_s17 = scalar_lea.vmem (!%p2952_p6), [#allocation4], %s2733_s21 }
 0x154   : > { %2205 = dma.done.wait (%p2953_p0), %s506_s20, 128  }
 0x155   : > { %2207 = vsyncadd (%p2953_p0), %s506_s20, 4294967168  ;;  %s514_s25 = sand.u32 1, %s2366_s23   ;;  %s518_s9 = scalar_lea.vmem [#allocation7], %s2733_s21 }
 0x156   : > { %s515_s5 = scalar_lea.sflag [#allocation8], %s514_s25 }
 0x157   : > { %2209 = dma.done.wait (%p2953_p0), %s515_s5, 256  }
 0x158   : > { %2211 = vsyncadd (%p2953_p0), %s515_s5, 4294967040  ;;  %s527_s12 = scalar_lea.vmem [#allocation9], %s2733_s21  ;;  %p2954_p7 = scmp.eq.s32.totalorder %s2366_s23, 0 }
 0x15a   : > { %2213 = dma.done.wait (%p2954_p7), [#allocation11], 1040   ;;  %p2955_p11 = pmov %p2954_p7 }
 0x15b   : > { %p2956_p13 = pmov %p2954_p7 }
 0x15c   : > { %2215 = vsyncadd (%p2955_p11), [#allocation11], 4294966256 }
 0x15d   : > { %2217 = dma.done.wait (%p2956_p13), [#allocation14], 1040   ;;  %p2957_p2 = pmov %p2954_p7 }
 0x15f   : > { %2219 = vsyncadd (%p2957_p2), [#allocation14], 4294966256  ;;  %p2958_p4 = pmov %p2957_p2 }
 0x160   : > { %p2959_p8 = pmov %p2957_p2 }
 0x161   : > { %2221 = dma.done.wait (%p2958_p4), [#allocation17], 1040  }
 0x162   : > { %2223 = vsyncadd (%p2959_p8), [#allocation17], 4294966256  ;;  %p2960_p12 = pmov %p2957_p2 }
 0x163   : > { %p2961_p9 = pmov %p2957_p2 }
 0x164   : > { %2225 = dma.done.wait (%p2960_p12), [#allocation20], 1040  }
 0x165   : > { %2227 = vsyncadd (%p2961_p9), [#allocation20], 4294966256  ;;  %v2269_v0 = vmov 0.0   ;;  %vm2270_vm0 = vmmov 0   ;;  %v1799_v1 = vld [vmem:[#allocation16] sm:$0xff]   ;;  %v1800_v2 = vld [vmem:[#allocation16 + $0x8] sm:$0xff]   ;;  %v855_v36 = vlaneseq }
 0x166   : > { %1567 = vmatprep.subr.bf16.mxu1 %v2269_v0  ;;  %1547 = vmatprep.subr.bf16.mxu0 %v2269_v0  ;;  %v1801_v3 = vld [vmem:[#allocation16 + $0x10] sm:$0xff]   ;;  %v1805_v4 = vld [vmem:[#allocation13] sm:$0xff]   ;;  %v1807_v5 = vld [vmem:[#allocation13 + $0x8] sm:$0xff]   ;;  %vm2271_vm2 = vmmov 1   ;;  %s2962_s23 = sld [smem:[#allocation31_spill]]  ;;  %vm1152_vm4 = vcmask 130048  }
 0x167   : > { %1583 = vmatprep.mubr.msk.bf16.mxu1 %vm2270_vm0, %v2269_v0  ;;  %1563 = vmatprep.mubr.msk.bf16.mxu0 %vm2270_vm0, %v2269_v0  ;;  %v1802_v6 = vld [vmem:[#allocation16 + $0x18] sm:$0xff]   ;;  %v1809_v7 = vld [vmem:[#allocation13 + $0x10] sm:$0xff]   ;;  %v1803_v8 = vld [vmem:[#allocation16 + $0x20] sm:$0xff]   ;;  %v856_v37 = vshrl.u32 %v855_v36, 7  ;;  %s1454_s28 = sshll.u32 %s2730_s15, 4  ;;  %s2963_s29 = sld [smem:[#allocation45_spill]] }
 0x168   : > { %1568 = vmatpush3.bf16.msra.mxu1 %v1799_v1  ;;  %1548 = vmatpush3.bf16.msra.mxu0 %v1805_v4  ;;  %v1812_v9 = vld [vmem:[#allocation13 + $0x18] sm:$0xff]   ;;  %v1804_v10 = vld [vmem:[#allocation16 + $0x28] sm:$0xff]   ;;  %v1814_v11 = vld [vmem:[#allocation13 + $0x20] sm:$0xff]   ;;  %s607_s22 = scalar_lea.vmem [#allocation22], %s1454_s28  ;;  %s1200_s0 = scalar_lea.sflag [#allocation6], %s2730_s15 }
 0x169   : > { %1569 = vmatprep.subr.bf16.mxu1 %v2269_v0  ;;  %1549 = vmatprep.subr.bf16.mxu0 %v2269_v0  ;;  %v1806_v12 = vld [vmem:[#allocation16 + $0x30] sm:$0xff]   ;;  %v1816_v13 = vld [vmem:[#allocation13 + $0x28] sm:$0xff]   ;;  %v1808_v14 = vld [vmem:[#allocation16 + $0x38] sm:$0xff]   ;;  %v857_v38 = vadd.s32 8, %v856_v37  ;;  %s1215_s13 = sshll.u32 %s607_s22, 4  ;;  %p2964_p3 = scmp.ne.s32.totalorder %s2935_s30, 0  ;;  %s2818_s13 = int_to_ptr.vmem [resolvable:$true] %s1215_s13 }
 0x16a   : > { %v1818_v15 = vld [vmem:[#allocation13 + $0x30] sm:$0xff]   ;;  %v1811_v17 = vld [vmem:[#allocation10] sm:$0xff]   ;;  %v1813_v19 = vld [vmem:[#allocation10 + $0x8] sm:$0xff]   ;;  %s2152_s16 = scalar_lea.vmem %s2818_s13, 256  ;;  %s2272_s27 = smov [#allocation22]  }
 0x16b   : > { %v1810_v16 = vld [vmem:[%s527_s12] sm:$0xff]   ;;  %v1821_v20 = vld [vmem:[%s518_s9] sm:$0xff]   ;;  %vm859_vm1 = vcmp.lt.s32.totalorder %v857_v38, 12  ;;  %p2153_p10 = scmp.ne.s32.totalorder %s2818_s13, %s2152_s16  ;;  %s2156_s3 = sshll.u32 %s2272_s27, 4  ;;  %s2157_s3 = int_to_ptr.vmem [resolvable:$false] %s2156_s3 }
 0x16c   : > { %1570 = vmatpush3.bf16.msra.mxu1 %v1800_v2  ;;  %1550 = vmatpush3.bf16.msra.mxu0 %v1807_v5  ;;  %v1820_v18 = vld [vmem:[#allocation13 + $0x38] sm:$0xff]   ;;  %v1826_v21 = vld [vmem:[#allocation19] sm:$0xff]   ;;  %v1815_v22 = vld [vmem:[#allocation10 + $0x10] sm:$0xff]   ;;  %s1506_s11 = sshll.u32 %s2962_s23, 8  ;;  %s2158_s7 = scalar_lea.vmem %s2157_s3, 512 }
 0x16d   : > { %1571 = vmatprep.subr.bf16.mxu1 %v2269_v0  ;;  %1551 = vmatprep.subr.bf16.mxu0 %v2269_v0  ;;  %v1827_v23 = vld [vmem:[#allocation19 + $0x8] sm:$0xff]   ;;  %v1817_v24 = vld [vmem:[#allocation10 + $0x18] sm:$0xff]   ;;  %v1819_v26 = vld [vmem:[#allocation10 + $0x20] sm:$0xff]   ;;  %s2823_s24 = scalar_lea.hbm %s2963_s29, %s1506_s11  ;;  %p2154_p5 = pnand %p2153_p10, %p2964_p3 }
 0x16e   : > { %v1828_v25 = vld [vmem:[#allocation19 + $0x10] sm:$0xff]   ;;  %v1829_v27 = vld [vmem:[#allocation19 + $0x18] sm:$0xff]   ;;  %v1822_v28 = vld [vmem:[#allocation10 + $0x28] sm:$0xff]   ;;  %p2159_p6 = scmp.lt.s32.totalorder %s2818_s13, %s2157_s3  ;;  %p2160_p0 = scmp.lt.s32.totalorder %s2158_s7, %s2152_s16 }
 0x16f   : > { %v1830_v29 = vld [vmem:[#allocation19 + $0x20] sm:$0xff]   ;;  %v1823_v30 = vld [vmem:[#allocation10 + $0x30] sm:$0xff]   ;;  %v1824_v32 = vld [vmem:[#allocation10 + $0x38] sm:$0xff]   ;;  %p2155_p1 = pneg %p2154_p5 }
 0x170   : > { %1572 = vmatpush3.bf16.msra.mxu1 %v1801_v3  ;;  %1552 = vmatpush3.bf16.msra.mxu0 %v1809_v7  ;;  %v1831_v31 = vld [vmem:[#allocation19 + $0x28] sm:$0xff]   ;;  %v1832_v34 = vld [vmem:[#allocation19 + $0x30] sm:$0xff]   ;;  %v1833_v35 = vld [vmem:[#allocation19 + $0x38] sm:$0xff]   ;;  %p2161_p7 = por %p2160_p0, %p2159_p6 }
 0x171   : > { %1573 = vmatprep.subr.bf16.mxu1 %v2269_v0  ;;  %1553 = vmatprep.subr.bf16.mxu0 %v2269_v0  ;;  %v1825_v33 = vld [vmem:[%s509_s17] sm:$0xff]   ;;  %v1465_v39 = vld [vmem:[#allocation18] ss:$0 sm:$0xff]  ;;  %vm1483_vm3 = vmpackc.low %vm859_vm1, %vm2271_vm2 }
 0x172   : > { %v1455_v46 = vld [vmem:[#allocation15] ss:$0 sm:$0xff]  ;;  %v1486_v55 = vld [vmem:[#allocation12] ss:$0 sm:$0xff]  ;;  %p2162_p11 = pnand %p2161_p7, %p2155_p1 }
 0x174   : > { %1574 = vmatpush3.bf16.msra.mxu1 %v1802_v6  ;;  %1554 = vmatpush3.bf16.msra.mxu0 %v1812_v9 }
 0x175   : > { %1575 = vmatprep.subr.bf16.mxu1 %v2269_v0  ;;  %1555 = vmatprep.subr.bf16.mxu0 %v2269_v0 }
 0x178   : > { %1576 = vmatpush3.bf16.msra.mxu1 %v1803_v8  ;;  %1556 = vmatpush3.bf16.msra.mxu0 %v1814_v11 }
 0x179   : > { %1577 = vmatprep.subr.bf16.mxu1 %v2269_v0  ;;  %1557 = vmatprep.subr.bf16.mxu0 %v2269_v0 }
 0x17c   : > { %1578 = vmatpush3.bf16.msra.mxu1 %v1804_v10  ;;  %1558 = vmatpush3.bf16.msra.mxu0 %v1816_v13 }
 0x17d   : > { %1579 = vmatprep.subr.bf16.mxu1 %v2269_v0  ;;  %1559 = vmatprep.subr.bf16.mxu0 %v2269_v0 }
 0x180   : > { %1580 = vmatpush3.bf16.msra.mxu1 %v1806_v12  ;;  %1560 = vmatpush3.bf16.msra.mxu0 %v1818_v15 }
 0x181   : > { %1581 = vmatprep.subr.bf16.mxu1 %v2269_v0  ;;  %1561 = vmatprep.subr.bf16.mxu0 %v2269_v0 }
 0x184   : > { %1582 = vmatpush3.bf16.msra.mxu1 %v1808_v14  ;;  %1562 = vmatpush3.bf16.msra.mxu0 %v1820_v18 }
 0x185   : > { %1607 = vmatprep.subr.bf16.mxu1 %v2269_v0  ;;  %1587 = vmatprep.subr.bf16.mxu0 %v2269_v0 }
 0x187   : > { %1584 = vmatmul.mubr.bf16.vlgmr.msra.gmra.mrb[0].mxu1 %v1810_v16  ;;  %1564 = vmatmul.mubr.bf16.vlgmr.msra.gmra.mrb[0].mxu0 %v1821_v20 }
 0x188   : > { %1608 = vmatpush3.bf16.msra.mxu1 %v1811_v17  ;;  %1623 = vmatprep.mubr.msk.bf16.mxu1 %vm2270_vm0, %v2269_v0  ;;  %v1496_v17 = vld [vmem:[#allocation21] ss:$0 sm:$0xff] }
 0x189   : > { %1609 = vmatprep.subr.bf16.mxu1 %v2269_v0  ;;  %1588 = vmatpush3.bf16.msra.mxu0 %v1826_v21 }
 0x18a   : > { %1603 = vmatprep.mubr.msk.bf16.mxu0 %vm2270_vm0, %v2269_v0  ;;  %1589 = vmatprep.subr.bf16.mxu0 %v2269_v0 }
 0x18c   : > { %1610 = vmatpush3.bf16.msra.mxu1 %v1813_v19 }
 0x18d   : > { %1611 = vmatprep.subr.bf16.mxu1 %v2269_v0  ;;  %1590 = vmatpush3.bf16.msra.mxu0 %v1827_v23 }
 0x18e   : > { %1591 = vmatprep.subr.bf16.mxu0 %v2269_v0 }
 0x190   : > { %1612 = vmatpush3.bf16.msra.mxu1 %v1815_v22 }
 0x191   : > { %1613 = vmatprep.subr.bf16.mxu1 %v2269_v0  ;;  %1592 = vmatpush3.bf16.msra.mxu0 %v1828_v25 }
 0x192   : > { %1593 = vmatprep.subr.bf16.mxu0 %v2269_v0 }
 0x194   : > { %1614 = vmatpush3.bf16.msra.mxu1 %v1817_v24 }
 0x195   : > { %1615 = vmatprep.subr.bf16.mxu1 %v2269_v0  ;;  %1594 = vmatpush3.bf16.msra.mxu0 %v1829_v27 }
 0x196   : > { %1595 = vmatprep.subr.bf16.mxu0 %v2269_v0 }
 0x198   : > { %1616 = vmatpush3.bf16.msra.mxu1 %v1819_v26 }
 0x199   : > { %1617 = vmatprep.subr.bf16.mxu1 %v2269_v0  ;;  %1596 = vmatpush3.bf16.msra.mxu0 %v1830_v29 }
 0x19a   : > { %1597 = vmatprep.subr.bf16.mxu0 %v2269_v0 }
 0x19c   : > { %1618 = vmatpush3.bf16.msra.mxu1 %v1822_v28 }
 0x19d   : > { %1619 = vmatprep.subr.bf16.mxu1 %v2269_v0  ;;  %1598 = vmatpush3.bf16.msra.mxu0 %v1831_v31 }
 0x19e   : > { %1599 = vmatprep.subr.bf16.mxu0 %v2269_v0 }
 0x1a0   : > { %1620 = vmatpush3.bf16.msra.mxu1 %v1823_v30 }
 0x1a1   : > { %1621 = vmatprep.subr.bf16.mxu1 %v2269_v0  ;;  %1600 = vmatpush3.bf16.msra.mxu0 %v1832_v34 }
 0x1a2   : > { %1601 = vmatprep.subr.bf16.mxu0 %v2269_v0 }
 0x1a4   : > { %1622 = vmatpush3.bf16.msra.mxu1 %v1824_v32 }
 0x1a5   : > { %1633 = vmatprep.subr.bf16.mxu1 %v2269_v0  ;;  %1602 = vmatpush3.bf16.msra.mxu0 %v1833_v35 }
 0x1a6   : > { %1627 = vmatprep.subr.bf16.mxu0 %v2269_v0 }
 0x1a7   : > { %1624 = vmatmul.mubr.bf16.vlgmr.msra.gmra.mrb[4].mxu1 %v1825_v33 }
 0x1a8   : > { %1635 = vmatprep.mubr.msk.bf16.mxu1 %vm2270_vm0, %v2269_v0 }
 0x25a   : > { %v848_v40 = vpop.f32.mrb[0].mxu1  ;;  %v728_v48 = vpop.f32.mrb[0].mxu0 }
 0x25b   : > { %v849_v41 = vadd.f32 %v1465_v39, %v848_v40  ;;  %v1585_v42 = vpop.f32.mrb[1].mxu1  ;;  %v729_v49 = vadd.f32 %v1455_v46, %v728_v48  ;;  %v1565_v50 = vpop.f32.mrb[1].mxu0 }
 0x25c   : > { %v851_v43 = vpop.f32.mrb[2].mxu1  ;;  %v731_v51 = vpop.f32.mrb[2].mxu0 }
 0x25d   : > { %v852_v44 = vadd.f32 %v1465_v39, %v851_v43  ;;  %v1586_v45 = vpop.f32.mrb[3].mxu1  ;;  %v732_v52 = vadd.f32 %v1455_v46, %v731_v51  ;;  %v1566_v53 = vpop.f32.mrb[3].mxu0 }
 0x25f   : > { %v1484_v47 = vpack.c.bf16 %v852_v44, %v849_v41  ;;  %v968_v54 = vpack.c.bf16 %v732_v52, %v729_v49 }
 0x261   : > { %1604 = vmatmul.mubr.msk.bf16.vlgmr.msra.gmra.mrb[4].mxu0 %vm1483_vm3, %v1484_v47 }
 0x262   : > { %1629 = vmatprep.mubr.msk.bf16.mxu0 %vm2270_vm0, %v2269_v0  ;;  %1628 = vmatpush3.bf16.xpose.msra.mxu0 %v968_v54 }
 0x27a   : > { %v1085_v56 = vpop.f32.mrb[4].mxu1 }
 0x27b   : > { %v1625_v57 = vpop.f32.mrb[5].mxu1  ;;  %v1086_v59 = vadd.f32 %v1486_v55, %v1085_v56 }
 0x27c   : > { %v1088_v58 = vpop.f32.mrb[6].mxu1 }
 0x27d   : > { %v1089_v60 = vadd.f32 %v1486_v55, %v1088_v58  ;;  %v1626_v61 = vpop.f32.mrb[7].mxu1 }
 0x27f   : > { %v1092_v62 = vpack.c.bf16 %v1089_v60, %v1086_v59 }
 0x281   : > { %1630 = vmatmul.mubr.bf16.vlgmr.msra.gmra.mrb[8].mxu0 %v1092_v62 }
 0x334   : > { %v961_v63 = vpop.f32.mrb[4].mxu0 }
 0x335   : > { %v1605_v1 = vpop.f32.mrb[5].mxu0 }
 0x336   : > { %v964_v2 = vpop.f32.mrb[6].mxu0 }
 0x337   : > { %v970_v3 = vpack.c.bf16 %v964_v2, %v961_v63  ;;  %v1606_v4 = vpop.f32.mrb[7].mxu0 }
 0x339   : > { %1634 = vmatpush3.bf16.msra.mxu1 %v970_v3 }
 0x354   : > { %v1128_v0 = vpop.f32.mrb[8].mxu0 }
 0x355   : > { %v1135_v5 = vmul.f32 0.5, %v1128_v0  ;;  %v1631_v6 = vpop.f32.mrb[9].mxu0 }
 0x356   : > { %v1131_v7 = vpop.f32.mrb[10].mxu0 }
 0x357   : > { %1834 = vtanh.f32 %v1135_v5  ;;  %v1136_v8 = vmul.f32 0.5, %v1131_v7  ;;  %v1632_v9 = vpop.f32.mrb[11].mxu0 }
 0x359   : > { %1836 = vtanh.f32 %v1136_v8 }
 0x361   : > { %v1835_v10 = vpop.eup %1834 }
 0x362   : > { %v1139_v11 = vmul.f32 0.5, %v1835_v10 }
 0x363   : > { %v1837_v12 = vpop.eup %1836 }
 0x364   : > { %v1140_v13 = vmul.f32 0.5, %v1837_v12  ;;  %v1141_v14 = vadd.f32 0.5, %v1139_v11 }
 0x366   : > { %v1142_v15 = vadd.f32 0.5, %v1140_v13 }
 0x368   : > { %v1143_v16 = vpack.c.bf16 %v1142_v15, %v1141_v14 }
 0x36a   : > { %1636 = vmatmul.mubr.msk.bf16.vlgmr.msra.gmra.mrb[8].mxu1 %vm1152_vm4, %v1143_v16 }
 0x43d   : > { %v1190_v18 = vpop.f32.mrb[8].mxu1 }
 0x43e   : > { %v1191_v19 = vadd.f32 %v1496_v17, %v1190_v18  ;;  %v1637_v20 = vpop.f32.mrb[9].mxu1 }
 0x43f   : > { %v1193_v21 = vpop.f32.mrb[10].mxu1 }
 0x440   : > { %1197 = vst [vmem:[%s607_s22] sm:$0xff] %v1191_v19  ;;  %v1194_v22 = vadd.f32 %v1496_v17, %v1193_v21  ;;  %v1638_v23 = vpop.f32.mrb[11].mxu1 }
 0x442   : > { %1198 = vst [vmem:[%s607_s22 + $0x8] sm:$0xff] %v1194_v22 }
 0x443   : > { %2165 = shalt.err (!%p2162_p11)
}
 0x444   : > { %s2166_s21 = scalar_lea.hbm %s2823_s24, 256  ;;  %s2170_s25 = scalar_lea.hbm %s2963_s29, 512 }
 0x445   : > { %p2167_p13 = scmp.ne.s32.totalorder %s2823_s24, %s2166_s21  ;;  %p2171_p8 = scmp.lt.u32.totalorder %s2823_s24, %s2963_s29 }
 0x446   : > { %p2172_p12 = scmp.lt.u32.totalorder %s2170_s25, %s2166_s21  ;;  %p2174_p10 = scmp.lt.u32.totalorder %s2166_s21, %s2823_s24 }
 0x447   : > { %p2168_p2 = pnand %p2167_p13, %p2964_p3 }
 0x448   : > { %p2173_p9 = por %p2172_p12, %p2171_p8 }
 0x449   : > { %p2169_p4 = pneg %p2168_p2 }
 0x44a   : > { %p2175_p5 = por %p2174_p10, %p2173_p9 }
 0x44c   : > { %p2176_p1 = pnand %p2175_p5, %p2169_p4 }
 0x44e   : > { %2179 = shalt.err (!%p2176_p1)
}
 0x44f   : > { %s2273_s12 = smov 128   ;;  %s2274_s23 = smov 8  }
 0x450   : > { %1677 = dma.vmem_to_hbm [thread:$0]  (%p2964_p3), %s2818_s13, 256, %s2823_s24, %s1200_s0, %s2273_s12, %s2273_s12, %s2274_s23  }
 0x451 PF: > { %s2965_s28 = sld [smem:[#allocation30_spill]]  ;;  %s2966_s22 = sld [smem:[#allocation37_spill]] }
 0x452   : > { %s2967_s11 = sld [smem:[#allocation33_spill]] }
 0x457   : > { %s1230_s26 = sand.u32 1, %s2965_s28   ;;  %p2968_p6 = scmp.ne.s32.totalorder %s2966_s22, 0 }
 0x458   : > { %p2969_p0 = scmp.ge.s32.totalorder %s2967_s11, 2  ;;  %s1231_s2 = scalar_lea.sflag [#allocation6], %s1230_s26 }
 0x45a   : > { %p1715_p7 = pnand %p2969_p0, %p2968_p6 }
 0x45c   : > { %2229 = dma.done.wait (!%p1715_p7), %s1231_s2, 256  }
 0x45d   : > { %2231 = vsyncadd (!%p1715_p7), %s1231_s2, 4294967040  ;;  %s34_s22 = sadd.s32 1, %s2967_s11   ;;  %s2970_s16 = sld [smem:[#allocation36_spill]] }
 0x45e   : > { %p31_p11 = scmp.ge.s32.totalorder %s34_s22, 4   ;;  %s2971_s20 = sld [smem:[#allocation32_spill]] }
 0x45f   : > { %s2972_s21 = sld [smem:[#allocation35_spill]]  ;;  %s2973_s17 = smov %s2238_s18 }
 0x460   : > { %s2974_s18 = smov %s2242_s19  ;;  %33 = sbr.rel (!%p31_p11) target bundleno = 21 (0x15), region = 169 }
 0x463   : > { %s2975_s19 = smov %s2970_s16 }
 0x467   :  { %1236 = vsyncpa [#allocation5], 1 }
 0x468   :  { %1238 = vsyncpa [#allocation5 + $0x1], 1 }
 0x469   :  { %1239 = vsyncpa [#allocation8], 1 }
 0x46a   :  { %1241 = vsyncpa [#allocation8 + $0x1], 1 }
 0x46b   :  { %1242 = vsyncpa [#allocation11], 1 }
 0x46c   :  { %1243 = vsyncpa [#allocation14], 1 }
 0x46d   :  { %1244 = vsyncpa [#allocation17], 1 }
 0x46e   :  { %1245 = vsyncpa [#allocation20], 1 }
 0x46f   :  { %1246 = vsyncpa [#allocation6], 1 }
 0x470   :  { %1248 = vsyncpa [#allocation6 + $0x1], 1 }

</bundles_post_ra>
